<compile_context>
chip_gen: v7x
topology: tpu7x:2x2x1
jax: 0.10.0
libtpu: 0.0.40
codegen_flags: <defaults>
</compile_context>

<pallas_src>
import jax
import jax.numpy as jnp
from jax.experimental import pallas as pl
from jax.experimental.pallas import tpu as pltpu


def _make_kernel(inv_L):
    def kernel(x_ref, w1t_ref, w2t_ref, o_ref):
        # x_ref  : (TB, C, Lp)  batch-block of the input, kept in its own dtype
        # w1t_ref: (C, Cr)      fc[0].weight, pre-transposed (in x out)
        # w2t_ref: (Cr, C)      fc[2].weight, pre-transposed
        # o_ref  : (TB, C, Lp)
        x = x_ref[...]                                         # (TB, C, Lp)

        # AdaptiveAvgPool1d(1): zero-padded lanes contribute 0 to the sum,
        # so dividing by the *true* L gives the exact mean.
        y = jnp.sum(x, axis=-1, dtype=jnp.float32) * inv_L     # (TB, C) f32

        # fc[0] Linear(C -> C//r, bias=False) + fc[1] LeakyReLU(0.01)
        h = jnp.dot(y, w1t_ref[...], preferred_element_type=jnp.float32)
        h = jnp.where(h >= 0, h, 0.01 * h)                     # (TB, Cr)

        # fc[2] Linear(C//r -> C, bias=False) + fc[3] Sigmoid
        s = jnp.dot(h, w2t_ref[...], preferred_element_type=jnp.float32)
        s = jax.nn.sigmoid(s)                                  # (TB, C) f32

        # x * y.expand_as(x): broadcast the channel scale over the length axis.
        o_ref[...] = (x * s.astype(x.dtype)[:, :, None]).astype(o_ref.dtype)

    return kernel


def channel_attention(x, w1, w2, *, target_block_bytes=2 << 20):
    """Channel_Attention forward.

    x : (B, C, L)   -- NCL, same layout as the PyTorch module
    w1: (C//r, C)   -- fc[0].weight (PyTorch out x in layout)
    w2: (C, C//r)   -- fc[2].weight
    """
    B, C, L = x.shape
    Cr = w1.shape[0]

    # Lane-dense trailing dim: pad L up to a multiple of 128 with zeros.
    Lp = max(128, ((L + 127) // 128) * 128)

    # Batch elements per block: target ~2 MiB per block, but keep at least
    # 2 grid steps when B >= 2 so both v7x TensorCores have work.
    per_b_bytes = C * Lp * x.dtype.itemsize
    tb = max(1, min(B, target_block_bytes // max(per_b_bytes, 1)))
    if B >= 2:
        tb = min(tb, (B + 1) // 2)
    Bp = ((B + tb - 1) // tb) * tb

    # Zero-pad batch tail / length so every block is full (padded rows give
    # y = 0 -> s = 0.5 -> out = 0 and are sliced off below).
    if (Bp, Lp) != (B, L):
        x_p = jnp.pad(x, ((0, Bp - B), (0, 0), (0, Lp - L)))
    else:
        x_p = x

    # Pre-transpose the weights once; the kernel body re-executes every grid
    # step, so this removes a per-iteration XLU transpose (+ cast).
    w1t = w1.T  # (C, Cr)
    w2t = w2.T  # (Cr, C)

    grid = (Bp // tb,)

    # VMEM budget: in + out blocks are double-buffered, weights stay resident.
    block_bytes = tb * per_b_bytes
    w_bytes = (w1.size + w2.size) * w1.dtype.itemsize
    vmem_need = 4 * block_bytes + 2 * w_bytes + (2 << 20)
    vmem_limit = int(min(max(vmem_need, 16 << 20), 48 << 20))
    # TODO(synk): for very large C*L where a (tb, C, Lp) block cannot fit VMEM
    # (hit first on v7x, 64 MiB), switch to a two-phase L-tiled variant
    # (accumulate the mean over L tiles, then a separate broadcast-multiply).

    out = pl.pallas_call(
        _make_kernel(1.0 / L),
        out_shape=jax.ShapeDtypeStruct((Bp, C, Lp), x.dtype),
        grid_spec=pltpu.PrefetchScalarGridSpec(
            num_scalar_prefetch=0,
            grid=grid,
            in_specs=[
                pl.BlockSpec((tb, C, Lp), lambda b: (b, 0, 0)),
                pl.BlockSpec((C, Cr), lambda b: (0, 0)),
                pl.BlockSpec((Cr, C), lambda b: (0, 0)),
            ],
            out_specs=pl.BlockSpec((tb, C, Lp), lambda b: (b, 0, 0)),
        ),
        compiler_params=pltpu.CompilerParams(
            dimension_semantics=("parallel",),
            vmem_limit_bytes=vmem_limit,
        ),
    )(x_p, w1t, w2t)

    if (Bp, Lp) != (B, L):
        out = out[:B, :, :L]
    return out


def channel_attention_ref(x, w1, w2):
    y = jnp.mean(x, axis=-1)                       # (B, C)
    h = y @ w1.T
    h = jnp.where(h >= 0, h, 0.01 * h)             # LeakyReLU default slope
    s = jax.nn.sigmoid(h @ w2.T)                   # (B, C)
    return x * s[:, :, None]


if __name__ == "__main__":
    # Small shapes consistent with the module: in_planes=C, ratio=2.
    B, C, L = 2, 8, 16
    ratio = 2
    Cr = C // ratio

    key = jax.random.PRNGKey(0)
    kx, k1, k2 = jax.random.split(key, 3)
    x = jax.random.normal(kx, (B, C, L), dtype=jnp.float32)
    # Deterministic synthetic weights (PyTorch Linear weight layout: (out, in)).
    w1 = 0.1 * jax.random.normal(k1, (Cr, C), dtype=jnp.float32)
    w2 = 0.1 * jax.random.normal(k2, (C, Cr), dtype=jnp.float32)

    out = channel_attention(x, w1, w2)
    out = jax.block_until_ready(out)

    ref = channel_attention_ref(x, w1, w2)
    assert out.shape == (B, C, L)
    assert jnp.allclose(out, ref, atol=1e-5, rtol=1e-5)

    print("KERNEL_OK")
</pallas_src>

<mosaic_0001>
module attributes {stable_mosaic.version = 11 : i64} {
  func.func @kernel(%arg0: i32, %arg1: memref<1x8x128xf32, #tpu.memory_space<vmem>>, %arg2: memref<8x4xf32, #tpu.memory_space<vmem>>, %arg3: memref<4x8xf32, #tpu.memory_space<vmem>>, %arg4: memref<1x8x128xf32, #tpu.memory_space<vmem>>) attributes {dimension_semantics = [#tpu.dimension_semantics<parallel>], iteration_bounds = array<i64: 2>, scalar_prefetch = 0 : i64, scratch_operands = 0 : i64, tpu.core_type = #tpu.core_type<tc>, window_params = [{transform_indices = @transform_0, window_bounds = array<i64: 1, 8, 128>}, {pipeline_mode = #tpu.pipeline_mode<synchronous>, transform_indices = @transform_1, window_bounds = array<i64: 8, 4>}, {pipeline_mode = #tpu.pipeline_mode<synchronous>, transform_indices = @transform_2, window_bounds = array<i64: 4, 8>}, {transform_indices = @transform_3, window_bounds = array<i64: 1, 8, 128>}]} {
    %c0 = arith.constant 0 : index
    %c0_0 = arith.constant 0 : index
    %c0_1 = arith.constant 0 : index
    %0 = vector.load %arg1[%c0, %c0_0, %c0_1] : memref<1x8x128xf32, #tpu.memory_space<vmem>>, vector<1x8x128xf32>
    %cst = arith.constant dense<0.000000e+00> : vector<1x8xf32>
    %1 = vector.multi_reduction <add>, %0, %cst [2] : vector<1x8x128xf32> to vector<1x8xf32>
    %cst_2 = arith.constant 6.250000e-02 : f32
    %2 = vector.broadcast %cst_2 : f32 to vector<1x8xf32>
    %3 = arith.mulf %1, %2 : vector<1x8xf32>
    %c0_3 = arith.constant 0 : index
    %c0_4 = arith.constant 0 : index
    %4 = vector.load %arg2[%c0_3, %c0_4] : memref<8x4xf32, #tpu.memory_space<vmem>>, vector<8x4xf32>
    %cst_5 = arith.constant dense<0.000000e+00> : vector<1x4xf32>
    %5 = tpu.matmul %3, %4, %cst_5 {dimension_numbers = #tpu.dot_dimension_numbers<[1], [0], [0], [1], [0, 0, 1, 1], [], []>} : vector<1x8xf32>, vector<8x4xf32>, vector<1x4xf32> -> vector<1x4xf32>
    %cst_6 = arith.constant 0.000000e+00 : f32
    %6 = vector.broadcast %cst_6 : f32 to vector<1x4xf32>
    %7 = arith.cmpf oge, %5, %6 : vector<1x4xf32>
    %cst_7 = arith.constant 0.00999999977 : f32
    %8 = vector.broadcast %cst_7 : f32 to vector<1x4xf32>
    %9 = arith.mulf %8, %5 : vector<1x4xf32>
    %10 = arith.select %7, %5, %9 : vector<1x4xi1>, vector<1x4xf32>
    %c0_8 = arith.constant 0 : index
    %c0_9 = arith.constant 0 : index
    %11 = vector.load %arg3[%c0_8, %c0_9] : memref<4x8xf32, #tpu.memory_space<vmem>>, vector<4x8xf32>
    %cst_10 = arith.constant dense<0.000000e+00> : vector<1x8xf32>
    %12 = tpu.matmul %10, %11, %cst_10 {dimension_numbers = #tpu.dot_dimension_numbers<[1], [0], [0], [1], [0, 0, 1, 1], [], []>} : vector<1x4xf32>, vector<4x8xf32>, vector<1x8xf32> -> vector<1x8xf32>
    %13 = arith.negf %12 : vector<1x8xf32>
    %14 = math.exp %13 : vector<1x8xf32>
    %cst_11 = arith.constant 1.000000e+00 : f32
    %15 = vector.broadcast %cst_11 : f32 to vector<1x8xf32>
    %16 = arith.addf %15, %14 : vector<1x8xf32>
    %17 = arith.divf %15, %16 : vector<1x8xf32>
    %18 = vector.shape_cast %17 : vector<1x8xf32> to vector<1x8x1xf32>
    %19 = vector.broadcast %18 : vector<1x8x1xf32> to vector<1x8x128xf32>
    %20 = arith.mulf %0, %19 : vector<1x8x128xf32>
    %c0_12 = arith.constant 0 : index
    %c0_13 = arith.constant 0 : index
    %c0_14 = arith.constant 0 : index
    %21 = vector.load %arg4[%c0_12, %c0_13, %c0_14] : memref<1x8x128xf32, #tpu.memory_space<vmem>>, vector<1x8x128xf32>
    tpu.vector_store %arg4[%c0_12, %c0_13, %c0_14], %20 {strides = array<i32>} : memref<1x8x128xf32, #tpu.memory_space<vmem>>, vector<1x8x128xf32>,
    return
  }
  func.func @transform_0(%arg0: i32) -> (i32, i32, i32) {
    %c0_i32 = arith.constant 0 : i32
    %c0_i32_0 = arith.constant 0 : i32
    %c0_i32_1 = arith.constant 0 : i32
    return %arg0, %c0_i32, %c0_i32_0 : i32, i32, i32
  }
  func.func @transform_1(%arg0: i32) -> (i32, i32) {
    %c0_i32 = arith.constant 0 : i32
    %c0_i32_0 = arith.constant 0 : i32
    %c0_i32_1 = arith.constant 0 : i32
    return %c0_i32, %c0_i32_0 : i32, i32
  }
  func.func @transform_2(%arg0: i32) -> (i32, i32) {
    %c0_i32 = arith.constant 0 : i32
    %c0_i32_0 = arith.constant 0 : i32
    %c0_i32_1 = arith.constant 0 : i32
    return %c0_i32, %c0_i32_0 : i32, i32
  }
  func.func @transform_3(%arg0: i32) -> (i32, i32, i32) {
    %c0_i32 = arith.constant 0 : i32
    %c0_i32_0 = arith.constant 0 : i32
    %c0_i32_1 = arith.constant 0 : i32
    return %arg0, %c0_i32, %c0_i32_0 : i32, i32, i32
  }
}

</mosaic_0001>

<bundles_post_ra>
// kernel: tpu_custom_call.1
= control target key start
LH: loop header
LB: loop body
LE: loop exit
PB: predicated region body
PF: predicated region fallthrough
CT: control target
= control target key end

     0   :  { %8 = vsyncpa [#allocation3], 0  ;;  %s827_s0 = inlined_call_operand.hbm [shape: f32[2,8,128], index: 0, kind: input, shape index: {}]   ;;  %s828_s1 = inlined_call_operand.vmem [shape: f32[8,4], index: 1, kind: input, shape index: {}]   ;;  %s829_s2 = inlined_call_operand.vmem [shape: f32[4,8], index: 2, kind: input, shape index: {}]   ;;  %s830_s3 = inlined_call_operand.hbm [shape: f32[2,8,128], index: 3, kind: output, shape index: {}]  }
   0x1   :  { %10 = vsyncpa [#allocation3 + $0x1], 0 }
   0x2   :  { %11 = vsyncpa [#allocation4], 0 }
   0x3   :  { %13 = vsyncpa [#allocation4 + $0x1], 0  ;;  %s656_s12 = smov 0   ;;  %s658_s13 = smov 0  }
   0x4   :  { %s660_s14 = smov 0   ;;  %s662_s15 = smov 0  }
   0x5 LB: > { %s677_s16 = sadd.s32 4294967295, %s630_s15   ;;  %s452_s17 = sadd.s32 4294967294, %s630_s15   ;;  %s630_s15 = sphi %s662_s15, %s845_s15   ;;  %s626_s14 = sphi %s660_s14, %s844_s14   ;;  %s622_s13 = sphi %s658_s13, %s843_s13   ;;  %s618_s12 = sphi %s656_s12, %s842_s12  }
   0x6   : > { %s681_s18 = sadd.s32 1, %s630_s15   ;;  %s26_s19 = sadd.s32 1, %s626_s14 }
   0x7   : > { %s23_s20 = ssub.s32 %s630_s15, %s681_s18  ;;  %p33_p0 = scmp.ne.s32.totalorder %s626_s14, %s622_s13 }
   0x8   : > { %p24_p1 = scmp.eq.s32.totalorder %s23_s20, 0  ;;  %p34_p2 = scmp.eq.s32.totalorder %s630_s15, 0 }
   0x9   : > { %p39_p3 = scmp.ne.s32.totalorder %s622_s13, %s618_s12  ;;  %p40_p4 = scmp.eq.s32.totalorder %s677_s16, 0 }
   0xa   : > { %s693_s21 = scalar_select %p24_p1, %s626_s14, %s26_s19  }
   0xb   : > { %p695_p5 = por %p34_p2, %p33_p0  ;;  %p699_p6 = por %p40_p4, %p39_p3 }
   0xc   : > { %p105_p7 = scmp.eq.s32.totalorder %s677_s16, 1  ;;  %p111_p8 = scmp.eq.s32.totalorder %s452_s17, 1 }
   0xd   : > { %p494_p10 = scmp.lt.s32.totalorder %s630_s15, 2  ;;  %s137_s26 = sand.u32 1, %s626_s14  }
   0xe   : > { %p706_p11 = por %p105_p7, %p33_p0  ;;  %p710_p12 = por %p111_p8, %p39_p3 }
   0xf   : > { %s456_s27 = sshll.u32 %s630_s15, 7  ;;  %s455_s28 = sshll.u32 %s137_s26, 3 }
  0x10   : > { %s834_s24 = scalar_select %p706_p11, 1, 0 }
  0x11   : > { %s835_s25 = scalar_select %p710_p12, 1, 0 }
  0x12   : > { %s719_s4 = scalar_lea.hbm %s827_s0, %s456_s27  ;;  %s141_s5 = scalar_lea.vmem [#allocation2], %s455_s28 }
  0x13   : > { %s148_s6 = sshll.u32 %s141_s5, 4  ;;  %p723_p13 = pnand %p494_p10, %p695_p5  ;;  %s727_s6 = int_to_ptr.vmem [resolvable:$true] %s148_s6 }
  0x14   : > { %s138_s8 = scalar_lea.sflag [#allocation3], %s137_s26  ;;  %s534_s9 = scalar_lea.hbm %s719_s4, 128 }
  0x15   : > { %p535_p2 = scmp.ne.s32.totalorder %s719_s4, %s534_s9  ;;  %p536_p3 = pneg %p723_p13 }
  0x16   : > { %s539_s17 = scalar_lea.hbm %s827_s0, 256  ;;  %p540_p5 = scmp.lt.u32.totalorder %s719_s4, %s827_s0 }
  0x17   : > { %p537_p4 = pnand %p536_p3, %p535_p2  ;;  %p541_p8 = scmp.lt.u32.totalorder %s539_s17, %s534_s9 }
  0x18   : > { %p543_p9 = scmp.lt.u32.totalorder %s534_s9, %s719_s4 }
  0x19   : > { %p538_p7 = pneg %p537_p4  ;;  %p542_p10 = por %p541_p8, %p540_p5 }
  0x1b   : > { %p544_p0 = por %p543_p9, %p542_p10 }
  0x1d   : > { %p545_p1 = pnand %p544_p0, %p538_p7 }
  0x1f   : > { %548 = shalt.err (!%p545_p1)
}
  0x20   : > { %s549_s22 = scalar_lea.vmem %s727_s6, 128  ;;  %s632_s26 = smov [#allocation2]  }
  0x21   : > { %p550_p2 = scmp.ne.s32.totalorder %s727_s6, %s549_s22  ;;  %s554_s27 = sshll.u32 %s632_s26, 4  ;;  %s555_s27 = int_to_ptr.vmem [resolvable:$false] %s554_s27 }
  0x22   : > { %s556_s28 = scalar_lea.vmem %s555_s27, 256  ;;  %p557_p11 = scmp.lt.s32.totalorder %s727_s6, %s555_s27 }
  0x23   : > { %p552_p4 = pnand %p550_p2, %p536_p3  ;;  %p558_p5 = scmp.lt.s32.totalorder %s556_s28, %s549_s22 }
  0x25   : > { %p553_p12 = pneg %p552_p4  ;;  %p559_p8 = por %p558_p5, %p557_p11 }
  0x27   : > { %p560_p9 = pnand %p559_p8, %p553_p12 }
  0x29   : > { %563 = shalt.err (!%p560_p9)
}
  0x2a   : > { %489 = dma.hbm_to_vmem [thread:$0]  (!%p723_p13), %s719_s4, 128, %s727_s6, %s138_s8  }
  0x2b   : > { %p837_p0 = scmp.lt.s32.totalorder %s630_s15, 3  ;;  %p838_p1 = scmp.ge.s32.totalorder %s630_s15, 1 }
  0x2d   : > { %p154_p3 = pnand %p838_p1, %p837_p0 }
  0x2e   : > { %s761_s29 = sand.u32 (!%p154_p3), 1, %s622_s13  }
  0x2f   : > { %157 = sbr.rel (%p154_p3) target bundleno = 788 (0x314), region = 32  ;;  %s458_s30 = sshll.u32 (!%p154_p3), %s761_s29, 3 }
  0x30   : > { %s160_s5 = scalar_lea.sflag (!%p154_p3), [#allocation3], %s761_s29  ;;  %s163_s7 = scalar_lea.vmem (!%p154_p3), [#allocation2], %s458_s30 }
  0x36   : > { %609 = dma.done.wait (%p699_p6), %s160_s5, 128  }
  0x37   : > { %611 = vsyncadd (%p699_p6), %s160_s5, 4294967168  ;;  %v186_v0 = vld [vmem:[%s163_s7] sm:$0xff]  ;;  %v633_v1 = vmov 0.0   ;;  %vm634_vm0 = vmmov 0   ;;  %v192_v3 = vlaneseq  ;;  %vm198_vm1 = vcmask 64512   ;;  %s465_s9 = sshll.u32 %s677_s16, 7 }
  0x38   : > { %187 = vadd.xlane.f32.xlu0 %v186_v0  ;;  %472 = vmatprep.subr.mxu0 %v633_v1  ;;  %v190_v2 = vld [vmem:[%s828_s1] sm:$0xff]  ;;  %vm279_vm2 = vcmask 1043456   ;;  %vm275_vm4 = vcmask 31744   ;;  %s185_s10 = scalar_lea.vmem [#allocation5], %s458_s30  ;;  %s783_s20 = scalar_lea.hbm %s830_s3, %s465_s9 }
  0x39   : > { %477 = vmatprep.subr.mxu1 %v633_v1  ;;  %473 = vmatpush3.msra.mxu0 %v190_v2  ;;  %v193_v4 = vand.u32 127, %v192_v3  ;;  %v195_v5 = vshrl.u32 %v192_v3, 7  ;;  %v274_v10 = vld [vmem:[%s829_s2] sm:$0xf]  ;;  %s382_s11 = sshll.u32 %s185_s10, 4  ;;  %s369_s22 = scalar_lea.sflag [#allocation4], %s761_s29  ;;  %s785_s11 = int_to_ptr.vmem [resolvable:$true] %s382_s11 }
  0x3a   : > { %474 = vmatprep.mubr.msk.f32.mxu0 %vm634_vm0, %v633_v1  ;;  %479 = vmatprep.mubr.msk.f32.mxu1 %vm634_vm0, %v633_v1  ;;  %s564_s26 = scalar_lea.vmem %s785_s11, 128  ;;  %p839_p11 = scmp.ne.s32.totalorder %s834_s24, 0 }
  0x3b   : > { %v196_v6 = vsub.s32 %v193_v4, %v195_v5  ;;  %478 = vmatpush3.msk.msra.mxu1 %vm279_vm2, %v274_v10  ;;  %v361_v20 = vsub.s32 0, %v195_v5  ;;  %p565_p6 = scmp.ne.s32.totalorder %s785_s11, %s564_s26  ;;  %s635_s16 = smov [#allocation5]  }
  0x3c   : > { %s568_s27 = sshll.u32 %s635_s16, 4  ;;  %s569_s27 = int_to_ptr.vmem [resolvable:$false] %s568_s27 }
  0x3d   : > { %p566_p12 = pnand %p565_p6, %p839_p11  ;;  %s570_s28 = scalar_lea.vmem %s569_s27, 256 }
  0x3e   : > { %p571_p7 = scmp.lt.s32.totalorder %s785_s11, %s569_s27  ;;  %p572_p10 = scmp.lt.s32.totalorder %s570_s28, %s564_s26 }
  0x3f   : > { %p567_p13 = pneg %p566_p12 }
  0x40   : > { %p573_p2 = por %p572_p10, %p571_p7 }
  0x42   : > { %p574_p4 = pnand %p573_p2, %p567_p13 }
  0xc5   : > { %v188_v7 = vpop.xlane.xlu0 %187 }
  0xc6   : > { %v189_v8 = vmul.f32 0.0625, %v188_v7 }
  0xc8   : > { %v197_v9 = vrot.slane %v189_v8, %v196_v6 }
  0xca   : > { %475 = vmatmul.mubr.msk.f32.vlgmr.msra.gmra.mrb[0].mxu0 %vm198_vm1, %v197_v9 }
 0x19d   : > { %v267_v11 = vpop.f32.mrb[0].mxu0 }
 0x19e   : > { %vm271_vm3 = vcmp.ge.f32.partialorder %v267_v11, 0.0  ;;  %v272_v12 = vmul.f32 0.01, %v267_v11  ;;  %v476_v13 = vpop.f32.mrb[1].mxu0 }
 0x1a0   : > { %v273_v14 = vsel %vm271_vm3, %v267_v11, %v272_v12 }
 0x1a1   : > { %480 = vmatmul.mubr.msk.f32.vlgmr.msra.gmra.mrb[0].mxu1 %vm275_vm4, %v273_v14 }
 0x274   : > { %v349_v15 = vpop.f32.mrb[0].mxu1 }
 0x275   : > { %v463_v16 = vmul.f32 -1.442695, %v349_v15  ;;  %v481_v17 = vpop.f32.mrb[1].mxu1 }
 0x277   : > { %530 = vpow2.f32 %v463_v16 }
 0x281   : > { %v531_v18 = vpop.eup %530 }
 0x282   : > { %v356_v19 = vadd.f32 1.0, %v531_v18 }
 0x284   : > { %532 = vrcp.f32 %v356_v19 }
 0x28e   : > { %v533_v21 = vpop.eup %532 }
 0x28f   : > { %v362_v22 = vrot.slane %v533_v21, %v361_v20 }
 0x291   : > { %364 = vbcast.lane.b32.xlu0 %v362_v22, 256 }
 0x303   : > { %v365_v23 = vpop.permute.xlu0 %364 }
 0x304   : > { %v366_v24 = vmul.f32 %v365_v23, %v186_v0 }
 0x306   : > { %367 = vst [vmem:[%s185_s10] sm:$0xff] %v366_v24 }
 0x307   : > { %577 = shalt.err (!%p574_p4)
}
 0x308   : > { %s578_s29 = scalar_lea.hbm %s783_s20, 128  ;;  %s582_s7 = scalar_lea.hbm %s830_s3, 256 }
 0x309   : > { %p579_p5 = scmp.ne.s32.totalorder %s783_s20, %s578_s29  ;;  %p583_p0 = scmp.lt.u32.totalorder %s783_s20, %s830_s3 }
 0x30a   : > { %p584_p1 = scmp.lt.u32.totalorder %s582_s7, %s578_s29  ;;  %p586_p6 = scmp.lt.u32.totalorder %s578_s29, %s783_s20 }
 0x30b   : > { %p580_p8 = pnand %p579_p5, %p839_p11 }
 0x30c   : > { %p585_p3 = por %p584_p1, %p583_p0 }
 0x30d   : > { %p581_p9 = pneg %p580_p8 }
 0x30e   : > { %p587_p12 = por %p586_p6, %p585_p3 }
 0x310   : > { %p588_p13 = pnand %p587_p12, %p581_p9 }
 0x312   : > { %591 = shalt.err (!%p588_p13)
}
 0x313   : > { %484 = dma.vmem_to_hbm [thread:$0]  (%p839_p11), %s785_s11, 128, %s783_s20, %s369_s22  }
 0x314 PF: > { %s394_s23 = sand.u32 1, %s618_s12   ;;  %p840_p7 = scmp.ne.s32.totalorder %s835_s25, 0 }
 0x315   : > { %p841_p10 = scmp.ge.s32.totalorder %s630_s15, 2  ;;  %s395_s8 = scalar_lea.sflag [#allocation4], %s394_s23 }
 0x317   : > { %p491_p2 = pnand %p841_p10, %p840_p7 }
 0x319   : > { %613 = dma.done.wait (!%p491_p2), %s395_s8, 128  }
 0x31a   : > { %615 = vsyncadd (!%p491_p2), %s395_s8, 4294967168  ;;  %p16_p4 = scmp.ge.s32.totalorder %s681_s18, 4   ;;  %s842_s12 = smov %s622_s13 }
 0x31b   : > { %s843_s13 = smov %s626_s14  ;;  %s844_s14 = smov %s693_s21 }
 0x31c   : > { %s845_s15 = smov %s681_s18  ;;  %18 = sbr.rel (!%p16_p4) target bundleno = 5 (0x5), region = 77 }
 0x323   :  { %400 = vsyncpa [#allocation3], 1 }
 0x324   :  { %402 = vsyncpa [#allocation3 + $0x1], 1 }
 0x325   :  { %403 = vsyncpa [#allocation4], 1 }
 0x326   :  { %405 = vsyncpa [#allocation4 + $0x1], 1 }

</bundles_post_ra>
